<compile_context>
chip_gen: v5e
topology: v5e:2x2
jax: 0.10.0
libtpu: 0.0.40
codegen_flags: <defaults>
</compile_context>

<pallas_src>
import jax
import jax.numpy as jnp
from jax.experimental import pallas as pl
from jax.experimental.pallas import tpu as pltpu

LANE = 128  # TPU lane width


def _round_up(n, m):
    return pl.cdiv(n, m) * m


def decoder_kernel(x_ref, w1_ref, b1_ref, w2_ref, b2_ref, w3_ref, b3_ref, o_ref):
    # x tile and weights arrive as bf16 (native MXU input dtype); all matmuls
    # accumulate in f32, bias-add + ReLU run in f32 on the VPU.
    x = x_ref[...]

    h1 = jnp.dot(x, w1_ref[...], preferred_element_type=jnp.float32) + b1_ref[...]
    h1 = jnp.maximum(h1, 0.0)

    h2 = jnp.dot(h1.astype(jnp.bfloat16), w2_ref[...],
                 preferred_element_type=jnp.float32) + b2_ref[...]
    h2 = jnp.maximum(h2, 0.0)

    y = jnp.dot(h2.astype(jnp.bfloat16), w3_ref[...],
                preferred_element_type=jnp.float32) + b3_ref[...]
    o_ref[...] = y.astype(o_ref.dtype)


def decoder_forward(x, params, tile_b=None):
    """x: [B, input_dim] float32. params: dict of (w1,b1,w2,b2,w3,b3) in f32."""
    w1, b1, w2, b2, w3, b3 = (
        params["w1"], params["b1"], params["w2"],
        params["b2"], params["w3"], params["b3"],
    )
    B, in_dim = x.shape
    out_dim = w3.shape[1]

    # --- Lane-dense output: zero-pad out_dim up to a multiple of 128. ---
    out_pad = _round_up(max(out_dim, LANE), LANE)
    if out_pad != out_dim:
        w3 = jnp.pad(w3, ((0, 0), (0, out_pad - out_dim)))
        b3 = jnp.pad(b3, ((0, 0), (0, out_pad - out_dim)))

    # --- bf16 MXU operands (weights pre-cast once; biases stay f32). ---
    x_bf = x.astype(jnp.bfloat16)
    w1_bf = w1.astype(jnp.bfloat16)
    w2_bf = w2.astype(jnp.bfloat16)
    w3_bf = w3.astype(jnp.bfloat16)

    # --- Batch tiling: tile_b rows per grid step, sublane-aligned (mult of 8). ---
    if tile_b is None:
        tile_b = min(512, _round_up(B, 8))
    tile_b = _round_up(tile_b, 8)
    B_pad = _round_up(B, tile_b)
    if B_pad != B:
        x_bf = jnp.pad(x_bf, ((0, B_pad - B), (0, 0)))

    grid = (B_pad // tile_b,)

    # Weights/biases: constant block index -> DMA'd once, resident in VMEM.
    const = lambda shape: pl.BlockSpec(shape, lambda i: (0,) * len(shape))

    y_pad = pl.pallas_call(
        decoder_kernel,
        out_shape=jax.ShapeDtypeStruct((B_pad, out_pad), jnp.float32),
        grid=grid,
        in_specs=[
            pl.BlockSpec((tile_b, in_dim), lambda i: (i, 0)),  # x tile
            const(w1_bf.shape), const(b1.shape),
            const(w2_bf.shape), const(b2.shape),
            const(w3_bf.shape), const(b3.shape),
        ],
        out_specs=pl.BlockSpec((tile_b, out_pad), lambda i: (i, 0)),
        compiler_params=pltpu.CompilerParams(
            dimension_semantics=("parallel",),  # batch tiles are independent
        ),
    )(x_bf, w1_bf, b1, w2_bf, b2, w3_bf, b3)

    # Strip batch padding and the lane padding on the output dim.
    return y_pad[:B, :out_dim]


def init_decoder_params(key, input_dim, out_dim, hidden_size=128):
    """Deterministic Xavier-uniform-style init (mirrors weights_init_)."""
    def xavier(key, fan_in, fan_out):
        limit = jnp.sqrt(6.0 / (fan_in + fan_out))
        return jax.random.uniform(
            key, (fan_in, fan_out), jnp.float32, minval=-limit, maxval=limit
        )

    k1, k2, k3 = jax.random.split(key, 3)
    return {
        "w1": xavier(k1, input_dim, hidden_size),
        "b1": jnp.zeros((1, hidden_size), jnp.float32),
        "w2": xavier(k2, hidden_size, hidden_size),
        "b2": jnp.zeros((1, hidden_size), jnp.float32),
        "w3": xavier(k3, hidden_size, out_dim),
        "b3": jnp.zeros((1, out_dim), jnp.float32),
    }


def decoder_reference(x, params):
    """Full-f32 reference (matches the PyTorch module's forward)."""
    h1 = jnp.maximum(x @ params["w1"] + params["b1"], 0.0)
    h2 = jnp.maximum(h1 @ params["w2"] + params["b2"], 0.0)
    return h2 @ params["w3"] + params["b3"]


if __name__ == "__main__":
    key = jax.random.PRNGKey(0)
    k_x, k_p = jax.random.split(key)

    batch, input_dim, out_dim, hidden = 64, 16, 8, 128
    x = jax.random.normal(k_x, (batch, input_dim), jnp.float32)
    params = init_decoder_params(k_p, input_dim, out_dim, hidden)

    # tile_b=16 -> 4 grid steps; exercises the batch pipeline at small scale.
    y = decoder_forward(x, params, tile_b=16)
    y = jax.block_until_ready(y)

    y_ref = decoder_reference(x, params)
    assert y.shape == (batch, out_dim)
    # bf16 MXU operands with f32 accumulation -> allow small quantization error.
    max_err = float(jnp.max(jnp.abs(y - y_ref)))
    assert jnp.allclose(y, y_ref, atol=5e-2, rtol=5e-2), (
        f"mismatch vs reference, max abs err = {max_err}"
    )

    print("KERNEL_OK")
</pallas_src>

<mosaic_0001>
module attributes {stable_mosaic.version = 11 : i64} {
  func.func @decoder_kernel(%arg0: i32, %arg1: memref<16x16xbf16, #tpu.memory_space<vmem>>, %arg2: memref<16x128xbf16, #tpu.memory_space<vmem>>, %arg3: memref<1x128xf32, #tpu.memory_space<vmem>>, %arg4: memref<128x128xbf16, #tpu.memory_space<vmem>>, %arg5: memref<1x128xf32, #tpu.memory_space<vmem>>, %arg6: memref<128x128xbf16, #tpu.memory_space<vmem>>, %arg7: memref<1x128xf32, #tpu.memory_space<vmem>>, %arg8: memref<16x128xf32, #tpu.memory_space<vmem>>) attributes {dimension_semantics = [#tpu.dimension_semantics<parallel>], iteration_bounds = array<i64: 4>, scalar_prefetch = 0 : i64, scratch_operands = 0 : i64, tpu.core_type = #tpu.core_type<tc>, window_params = [{transform_indices = @transform_0, window_bounds = array<i64: 16, 16>}, {pipeline_mode = #tpu.pipeline_mode<synchronous>, transform_indices = @transform_1, window_bounds = array<i64: 16, 128>}, {pipeline_mode = #tpu.pipeline_mode<synchronous>, transform_indices = @transform_2, window_bounds = array<i64: 1, 128>}, {pipeline_mode = #tpu.pipeline_mode<synchronous>, transform_indices = @transform_3, window_bounds = array<i64: 128, 128>}, {pipeline_mode = #tpu.pipeline_mode<synchronous>, transform_indices = @transform_4, window_bounds = array<i64: 1, 128>}, {pipeline_mode = #tpu.pipeline_mode<synchronous>, transform_indices = @transform_5, window_bounds = array<i64: 128, 128>}, {pipeline_mode = #tpu.pipeline_mode<synchronous>, transform_indices = @transform_6, window_bounds = array<i64: 1, 128>}, {transform_indices = @transform_7, window_bounds = array<i64: 16, 128>}]} {
    %c0 = arith.constant 0 : index
    %c0_0 = arith.constant 0 : index
    %0 = vector.load %arg1[%c0, %c0_0] : memref<16x16xbf16, #tpu.memory_space<vmem>>, vector<16x16xbf16>
    %c0_1 = arith.constant 0 : index
    %c0_2 = arith.constant 0 : index
    %1 = vector.load %arg2[%c0_1, %c0_2] : memref<16x128xbf16, #tpu.memory_space<vmem>>, vector<16x128xbf16>
    %cst = arith.constant dense<0.000000e+00> : vector<16x128xf32>
    %2 = tpu.matmul %0, %1, %cst {dimension_numbers = #tpu.dot_dimension_numbers<[1], [0], [0], [1], [0, 0, 1, 1], [], []>} : vector<16x16xbf16>, vector<16x128xbf16>, vector<16x128xf32> -> vector<16x128xf32>
    %c0_3 = arith.constant 0 : index
    %c0_4 = arith.constant 0 : index
    %3 = vector.load %arg3[%c0_3, %c0_4] : memref<1x128xf32, #tpu.memory_space<vmem>>, vector<1x128xf32>
    %4 = vector.broadcast %3 : vector<1x128xf32> to vector<16x128xf32>
    %5 = arith.addf %2, %4 : vector<16x128xf32>
    %cst_5 = arith.constant 0.000000e+00 : f32
    %6 = vector.broadcast %cst_5 : f32 to vector<16x128xf32>
    %7 = arith.maximumf %5, %6 : vector<16x128xf32>
    %8 = arith.truncf %7 : vector<16x128xf32> to vector<16x128xbf16>
    %c0_6 = arith.constant 0 : index
    %c0_7 = arith.constant 0 : index
    %9 = vector.load %arg4[%c0_6, %c0_7] : memref<128x128xbf16, #tpu.memory_space<vmem>>, vector<128x128xbf16>
    %cst_8 = arith.constant dense<0.000000e+00> : vector<16x128xf32>
    %10 = tpu.matmul %8, %9, %cst_8 {dimension_numbers = #tpu.dot_dimension_numbers<[1], [0], [0], [1], [0, 0, 1, 1], [], []>} : vector<16x128xbf16>, vector<128x128xbf16>, vector<16x128xf32> -> vector<16x128xf32>
    %c0_9 = arith.constant 0 : index
    %c0_10 = arith.constant 0 : index
    %11 = vector.load %arg5[%c0_9, %c0_10] : memref<1x128xf32, #tpu.memory_space<vmem>>, vector<1x128xf32>
    %12 = vector.broadcast %11 : vector<1x128xf32> to vector<16x128xf32>
    %13 = arith.addf %10, %12 : vector<16x128xf32>
    %cst_11 = arith.constant 0.000000e+00 : f32
    %14 = vector.broadcast %cst_11 : f32 to vector<16x128xf32>
    %15 = arith.maximumf %13, %14 : vector<16x128xf32>
    %16 = arith.truncf %15 : vector<16x128xf32> to vector<16x128xbf16>
    %c0_12 = arith.constant 0 : index
    %c0_13 = arith.constant 0 : index
    %17 = vector.load %arg6[%c0_12, %c0_13] : memref<128x128xbf16, #tpu.memory_space<vmem>>, vector<128x128xbf16>
    %cst_14 = arith.constant dense<0.000000e+00> : vector<16x128xf32>
    %18 = tpu.matmul %16, %17, %cst_14 {dimension_numbers = #tpu.dot_dimension_numbers<[1], [0], [0], [1], [0, 0, 1, 1], [], []>} : vector<16x128xbf16>, vector<128x128xbf16>, vector<16x128xf32> -> vector<16x128xf32>
    %c0_15 = arith.constant 0 : index
    %c0_16 = arith.constant 0 : index
    %19 = vector.load %arg7[%c0_15, %c0_16] : memref<1x128xf32, #tpu.memory_space<vmem>>, vector<1x128xf32>
    %20 = vector.broadcast %19 : vector<1x128xf32> to vector<16x128xf32>
    %21 = arith.addf %18, %20 : vector<16x128xf32>
    %c0_17 = arith.constant 0 : index
    %c0_18 = arith.constant 0 : index
    %22 = vector.load %arg8[%c0_17, %c0_18] : memref<16x128xf32, #tpu.memory_space<vmem>>, vector<16x128xf32>
    tpu.vector_store %arg8[%c0_17, %c0_18], %21 {strides = array<i32>} : memref<16x128xf32, #tpu.memory_space<vmem>>, vector<16x128xf32>,
    return
  }
  func.func @transform_0(%arg0: i32) -> (i32, i32) {
    %c0_i32 = arith.constant 0 : i32
    %c0_i32_0 = arith.constant 0 : i32
    return %arg0, %c0_i32 : i32, i32
  }
  func.func @transform_1(%arg0: i32) -> (i32, i32) {
    %c0_i32 = arith.constant 0 : i32
    %c0_i32_0 = arith.constant 0 : i32
    %c0_i32_1 = arith.constant 0 : i32
    return %c0_i32, %c0_i32_0 : i32, i32
  }
  func.func @transform_2(%arg0: i32) -> (i32, i32) {
    %c0_i32 = arith.constant 0 : i32
    %c0_i32_0 = arith.constant 0 : i32
    %c0_i32_1 = arith.constant 0 : i32
    return %c0_i32, %c0_i32_0 : i32, i32
  }
  func.func @transform_3(%arg0: i32) -> (i32, i32) {
    %c0_i32 = arith.constant 0 : i32
    %c0_i32_0 = arith.constant 0 : i32
    %c0_i32_1 = arith.constant 0 : i32
    return %c0_i32, %c0_i32_0 : i32, i32
  }
  func.func @transform_4(%arg0: i32) -> (i32, i32) {
    %c0_i32 = arith.constant 0 : i32
    %c0_i32_0 = arith.constant 0 : i32
    %c0_i32_1 = arith.constant 0 : i32
    return %c0_i32, %c0_i32_0 : i32, i32
  }
  func.func @transform_5(%arg0: i32) -> (i32, i32) {
    %c0_i32 = arith.constant 0 : i32
    %c0_i32_0 = arith.constant 0 : i32
    %c0_i32_1 = arith.constant 0 : i32
    return %c0_i32, %c0_i32_0 : i32, i32
  }
  func.func @transform_6(%arg0: i32) -> (i32, i32) {
    %c0_i32 = arith.constant 0 : i32
    %c0_i32_0 = arith.constant 0 : i32
    %c0_i32_1 = arith.constant 0 : i32
    return %c0_i32, %c0_i32_0 : i32, i32
  }
  func.func @transform_7(%arg0: i32) -> (i32, i32) {
    %c0_i32 = arith.constant 0 : i32
    %c0_i32_0 = arith.constant 0 : i32
    return %arg0, %c0_i32 : i32, i32
  }
}

</mosaic_0001>

<bundles_post_ra>
// kernel: tpu_custom_call.1
= control target key start
LH: loop header
LB: loop body
LE: loop exit
PB: predicated region body
PF: predicated region fallthrough
CT: control target
= control target key end

     0   :  { %12 = vsyncpa [#allocation3], 0  ;;  %s1098_s0 = inlined_call_operand.vmem [shape: bf16[64,16], index: 0, kind: input, shape index: {}]   ;;  %s1099_s1 = inlined_call_operand.vmem [shape: bf16[16,128], index: 1, kind: input, shape index: {}]   ;;  %s1100_s2 = inlined_call_operand.vmem [shape: f32[1,128], index: 2, kind: input, shape index: {}]   ;;  %s1101_s3 = inlined_call_operand.hbm [shape: bf16[128,128], index: 3, kind: input, shape index: {}]   ;;  %s1102_s4 = inlined_call_operand.vmem [shape: f32[1,128], index: 4, kind: input, shape index: {}]   ;;  %s1103_s5 = inlined_call_operand.hbm [shape: bf16[128,128], index: 5, kind: input, shape index: {}]   ;;  %s1104_s6 = inlined_call_operand.vmem [shape: f32[1,128], index: 6, kind: input, shape index: {}]   ;;  %s1105_s7 = inlined_call_operand.hbm [shape: f32[64,128], index: 7, kind: output, shape index: {}]  }
   0x1   :  { %13 = vsyncpa [#allocation6], 0 }
   0x2   :  { %14 = vsyncpa [#allocation4], 0 }
   0x3   :  { %16 = vsyncpa [#allocation4 + $0x1], 0  ;;  %s977_s24 = smov 0   ;;  %s979_s25 = smov 0  }
   0x4   :  { %s981_s26 = smov 0   ;;  %s983_s27 = smov 0  }
   0x5 LB: > { %s998_s28 = sadd.s32 4294967295, %s929_s27   ;;  %s624_s29 = sadd.s32 4294967294, %s929_s27   ;;  %s929_s27 = sphi %s983_s27, %s1112_s27   ;;  %s925_s26 = sphi %s981_s26, %s1111_s26   ;;  %s921_s25 = sphi %s979_s25, %s1110_s25   ;;  %s917_s24 = sphi %s977_s24, %s1109_s24  }
   0x6   : > { %s1002_s30 = sadd.s32 1, %s929_s27   ;;  %s181_s8 = sadd.s32 1, %s925_s26 }
   0x7   : > { %s178_s9 = ssub.s32 %s929_s27, %s1002_s30  ;;  %p191_p0 = scmp.ne.s32.totalorder %s925_s26, %s921_s25 }
   0x8   : > { %p179_p1 = scmp.eq.s32.totalorder %s178_s9, 0  ;;  %p192_p2 = scmp.eq.s32.totalorder %s998_s28, 3 }
   0x9   : > { %p197_p3 = scmp.ne.s32.totalorder %s921_s25, %s917_s24  ;;  %p198_p4 = scmp.eq.s32.totalorder %s624_s29, 3 }
   0xa   : > { %s1013_s10 = scalar_select %p179_p1, %s925_s26, %s181_s8  }
   0xb   : > { %p1015_p5 = por %p192_p2, %p191_p0  ;;  %p1019_p6 = por %p198_p4, %p197_p3 }
   0xc   : > { %p625_p7 = scmp.ge.s32.totalorder %s929_s27, 1  ;;  %p205_p8 = scmp.lt.s32.totalorder %s929_s27, 5 }
   0xd   : > { %p753_p9 = scmp.eq.s32.totalorder %s998_s28, 0  ;;  %s222_s16 = sshll.u32 %s1101_s3, 4  ;;  %s223_s16 = int_to_ptr.hbm [resolvable:$true] %s222_s16 }
   0xe   : > { %p1026_p10 = pnand %p625_p7, %p205_p8  ;;  %s931_s17 = smov [#allocation2]  }
   0xf   : > { %s224_s18 = sshll.u32 %s931_s17, 4  ;;  %s239_s21 = sshll.u32 %s1103_s5, 4  ;;  %s225_s18 = int_to_ptr.vmem [resolvable:$true] %s224_s18  ;;  %s240_s21 = int_to_ptr.hbm [resolvable:$true] %s239_s21 }
  0x10   : > { %p742_p11 = pneg %p1026_p10  ;;  %s932_s22 = smov 64  }
  0x11   : > { %s933_s23 = smov 4   ;;  %s934_s29 = smov [#allocation5]  }
  0x12   : > { %p743_p12 = pnand %p753_p9, %p742_p11  ;;  %s241_s8 = sshll.u32 %s934_s29, 4  ;;  %s242_s8 = int_to_ptr.vmem [resolvable:$true] %s241_s8 }
  0x13   : > { %269 = sbr.rel (%p1026_p10) target bundleno = 460 (0x1cc), region = 48 }
  0x14   : > { %745 = dma.hbm_to_vmem [thread:$0]  (!%p743_p12), %s223_s16, 1024, %s225_s18, [#allocation3], %s932_s22, %s932_s22, %s933_s23  }
  0x15   : > { %748 = dma.hbm_to_vmem [thread:$0]  (!%p743_p12), %s240_s21, 1024, %s242_s8, [#allocation6], %s932_s22, %s932_s22, %s933_s23  }
  0x18   : > { %904 = dma.done.wait (%p753_p9), [#allocation3], 1024  }
  0x19   : > { %906 = vsyncadd (%p753_p9), [#allocation3], 4294966272 }
  0x1a   : > { %908 = dma.done.wait (%p753_p9), [#allocation6], 1024  }
  0x1b   : > { %910 = vsyncadd (%p753_p9), [#allocation6], 4294966272  ;;  %s633_s9 = sshll.u32 %s998_s28, 1  ;;  %v714_v0 = vld [vmem:[%s1099_s1] sm:$0xff]  ;;  %v722_v1 = vld [vmem:[#allocation2 + $0x38] sm:$0xff]  ;;  %vm334_vm0 = vcmask 130048  }
  0x1c   : > { %p308_p13 = scmp.lt.s32.totalorder %s633_s9, 7  ;;  %345 = vmatpush.bf16.msra.mxu0 %v714_v0  ;;  %423 = vmatpush.bf16.msra.mxu1 %v722_v1  ;;  %v721_v3 = vld [vmem:[#allocation2 + $0x30] sm:$0xff]  ;;  %v720_v4 = vld [vmem:[#allocation2 + $0x28] sm:$0xff]  ;;  %v719_v5 = vld [vmem:[#allocation2 + $0x20] sm:$0xff]  ;;  %s304_s23 = sand.u32 1, %s921_s25  }
  0x1d   : > { %v718_v6 = vld [vmem:[#allocation2 + $0x18] sm:$0xff]  ;;  %v717_v7 = vld [vmem:[#allocation2 + $0x10] sm:$0xff]  ;;  %v716_v8 = vld [vmem:[#allocation2 + $0x8] sm:$0xff]  ;;  %s632_s29 = sshll.u32 %s304_s23, 4  ;;  %s525_s20 = scalar_lea.sflag [#allocation4], %s304_s23 }
  0x1e   : > { %s1114_s9 = smov (!%p308_p13, %s633_s9), 7  ;;  %v715_v9 = vld [vmem:[#allocation2] sm:$0xff]  ;;  %v730_v10 = vld [vmem:[#allocation5 + $0x38] sm:$0xff]  ;;  %v729_v11 = vld [vmem:[#allocation5 + $0x30] sm:$0xff]  ;;  %s306_s17 = scalar_lea.vmem [#allocation7], %s632_s29 }
  0x1f   : > { %s634_s14 = sshll.u32 %s1114_s9, 2  ;;  %508 = vmatpush.bf16.msra.mxu2 %v730_v10  ;;  %v728_v12 = vld [vmem:[#allocation5 + $0x28] sm:$0xff]  ;;  %v727_v13 = vld [vmem:[#allocation5 + $0x20] sm:$0xff]  ;;  %v726_v22 = vld [vmem:[#allocation5 + $0x18] sm:$0xff]  ;;  %s537_s18 = sshll.u32 %s306_s17, 4  ;;  %s538_s18 = int_to_ptr.vmem [resolvable:$true] %s537_s18 }
  0x20   : > { %s311_s16 = scalar_lea.vmem %s1098_s0, %s634_s14  ;;  %424 = vmatpush.bf16.msra.mxu1 %v721_v3  ;;  %v796_v15 = vld [vmem:[%s1100_s2] ss:$0 sm:$0xff]  ;;  %v725_v23 = vld [vmem:[#allocation5 + $0x10] sm:$0xff]  ;;  %v724_v24 = vld [vmem:[#allocation5 + $0x8] sm:$0xff]  ;;  %s731_s14 = sshll.u32 %s998_s28, 4 }
  0x21   : > { %v713_v2 = vld [vmem:[%s311_s16] sm:$0xff]  ;;  %s536_s16 = scalar_lea.hbm %s1105_s7, %s731_s14  ;;  %s879_s29 = scalar_lea.hbm %s1105_s7, 64 }
  0x22   : > { %643 = vmatmul.msk.bf16.vlgmr.msra.gmra.mxu0 %vm334_vm0, %v713_v2  ;;  %v723_v25 = vld [vmem:[#allocation5] sm:$0xff]  ;;  %s539_s19 = sshll.u32 %s536_s16, 4  ;;  %s540_s19 = int_to_ptr.hbm [resolvable:$true] %s539_s19 }
  0x23   : > { %509 = vmatpush.bf16.msra.mxu2 %v729_v11  ;;  %v797_v27 = vld [vmem:[%s1102_s4] ss:$0 sm:$0xff]  ;;  %s873_s21 = sshra.s32 %s540_s19, 4  ;;  %s874_s21 = int_to_ptr.hbm [resolvable:$true] %s873_s21 }
  0x24   : > { %425 = vmatpush.bf16.msra.mxu1 %v720_v4  ;;  %v798_v34 = vld [vmem:[%s1104_s6] ss:$0 sm:$0xff]  ;;  %s875_s28 = scalar_lea.hbm %s874_s21, 16  ;;  %p880_p3 = scmp.lt.s32.totalorder %s874_s21, %s1105_s7 }
  0x25   : > { %p876_p0 = scmp.ne.s32.totalorder %s874_s21, %s875_s28  ;;  %p881_p4 = scmp.lt.s32.totalorder %s879_s29, %s875_s28 }
  0x27   : > { %510 = vmatpush.bf16.msra.mxu2 %v728_v12  ;;  %p877_p1 = pnand %p876_p0, %p1015_p5  ;;  %p882_p7 = por %p881_p4, %p880_p3 }
  0x28   : > { %426 = vmatpush.bf16.msra.mxu1 %v719_v5 }
  0x29   : > { %p878_p2 = pneg %p877_p1 }
  0x2b   : > { %511 = vmatpush.bf16.msra.mxu2 %v727_v13  ;;  %p883_p8 = pnand %p882_p7, %p878_p2 }
  0x2c   : > { %427 = vmatpush.bf16.msra.mxu1 %v718_v6 }
  0x2f   : > { %512 = vmatpush.bf16.msra.mxu2 %v726_v22 }
  0x30   : > { %428 = vmatpush.bf16.msra.mxu1 %v717_v7 }
  0x33   : > { %513 = vmatpush.bf16.msra.mxu2 %v725_v23 }
  0x34   : > { %429 = vmatpush.bf16.msra.mxu1 %v716_v8 }
  0x37   : > { %514 = vmatpush.bf16.msra.mxu2 %v724_v24 }
  0x38   : > { %430 = vmatpush.bf16.msra.mxu1 %v715_v9 }
  0x3b   : > { %515 = vmatpush.bf16.msra.mxu2 %v723_v25 }
  0x9f   : > { %v347_v14 = vpop.f32.mrf.mxu0 }
  0xa0   : > { %v348_v16 = vadd.f32 %v796_v15, %v347_v14 }
  0xa2   : > { %v352_v19 = vmax.f32 %v348_v16, 0.0 }
  0xa7   : > { %v349_v17 = vpop.f32.mrf.mxu0 }
  0xa8   : > { %v350_v18 = vadd.f32 %v796_v15, %v349_v17 }
  0xaa   : > { %v353_v20 = vmax.f32 %v350_v18, 0.0 }
  0xac   : > { %v354_v21 = vpack.c.bf16 %v353_v20, %v352_v19 }
  0xae   : > { %431 = vmatmul.bf16.vlgmr.msra.gmra.mxu1 %v354_v21 }
 0x12b   : > { %v432_v26 = vpop.f32.mrf.mxu1 }
 0x12c   : > { %v433_v28 = vadd.f32 %v797_v27, %v432_v26 }
 0x12e   : > { %v437_v31 = vmax.f32 %v433_v28, 0.0 }
 0x133   : > { %v434_v29 = vpop.f32.mrf.mxu1 }
 0x134   : > { %v435_v30 = vadd.f32 %v797_v27, %v434_v29 }
 0x136   : > { %v438_v32 = vmax.f32 %v435_v30, 0.0 }
 0x138   : > { %v439_v33 = vpack.c.bf16 %v438_v32, %v437_v31 }
 0x13a   : > { %516 = vmatmul.bf16.vlgmr.msra.gmra.mxu2 %v439_v33 }
 0x1bd   : > { %v517_v35 = vpop.f32.mrf.mxu2 }
 0x1be   : > { %v518_v36 = vadd.f32 %v798_v34, %v517_v35 }
 0x1c0   : > { %522 = vst [vmem:[%s306_s17] sm:$0xff] %v518_v36 }
 0x1c5   : > { %v519_v37 = vpop.f32.mrf.mxu2 }
 0x1c6   : > { %v520_v38 = vadd.f32 %v798_v34, %v519_v37 }
 0x1c8   : > { %523 = vst [vmem:[%s306_s17 + $0x8] sm:$0xff] %v520_v38 }
 0x1c9   : > { %886 = shalt.err (!%p883_p8)
}
 0x1ca   : > { %s935_s23 = smov 128   ;;  %s936_s15 = smov 8  }
 0x1cb   : > { %740 = dma.vmem_to_hbm [thread:$0]  (%p1015_p5), %s538_s18, 256, %s540_s19, %s525_s20, %s935_s23, %s935_s23, %s936_s15  }
 0x1cc PF: > { %p757_p9 = scmp.ge.s32.totalorder %s929_s27, 2  ;;  %s554_s13 = sand.u32 1, %s917_s24  }
 0x1cd   : > { %s555_s16 = scalar_lea.sflag [#allocation4], %s554_s13 }
 0x1ce   : > { %p750_p10 = pnand %p757_p9, %p1019_p6 }
 0x1d0   : > { %p751_p11 = pneg %p750_p10 }
 0x1d2   : > { %912 = dma.done.wait (%p751_p11), %s555_s16, 256  }
 0x1d3   : > { %914 = vsyncadd (%p751_p11), %s555_s16, 4294967040  ;;  %p19_p12 = scmp.ge.s32.totalorder %s1002_s30, 6   ;;  %s1109_s24 = smov %s921_s25 }
 0x1d4   : > { %s1110_s25 = smov %s925_s26  ;;  %s1111_s26 = smov %s1013_s10 }
 0x1d5   : > { %s1112_s27 = smov %s1002_s30  ;;  %21 = sbr.rel (!%p19_p12) target bundleno = 5 (0x5), region = 92 }
 0x1da   :  { %561 = vsyncpa [#allocation3], 1 }
 0x1db   :  { %563 = vsyncpa [#allocation3 + $0x1], 1 }
 0x1dc   :  { %564 = vsyncpa [#allocation6], 1 }
 0x1dd   :  { %565 = vsyncpa [#allocation4], 1 }
 0x1de   :  { %567 = vsyncpa [#allocation4 + $0x1], 1 }

</bundles_post_ra>
